<compile_context>
chip_gen: v6e
topology: v6e:2x2x1
jax: 0.10.0
libtpu: 0.0.40
codegen_flags: <defaults>
</compile_context>

<pallas_src>
import functools

import jax
import jax.numpy as jnp
from jax import lax
from jax.experimental import pallas as pl
from jax.experimental.pallas import tpu as pltpu


def _resblock1d_kernel(*refs, K, stride, pad, Lout, proj):
    """One L-tile of the fused residual block.

    refs = (slab, xsc, w1, b1, w2, b2[, wsc, bsc], out)
      slab : (1, N*stride, TIN_d, Cin)  phase-split, halo'd conv1 input (compute dtype)
      xsc  : (N, TL, Csc)               stride-decimated shortcut input
      w1   : (K*Cin, Cop)  b1: (1, Cop) BN1-folded conv1 weights/bias
      w2   : (K*Cop, Cop)  b2: (1, Cop) BN2-folded conv2 weights/bias
      wsc  : (Cin, Cop)    bsc:(1, Cop) projection shortcut (only when proj=True)
      out  : (N, TL, Cop)
    """
    if proj:
        (xslab_ref, xsc_ref, w1_ref, b1_ref, w2_ref, b2_ref,
         wsc_ref, bsc_ref, out_ref) = refs
    else:
        (xslab_ref, xsc_ref, w1_ref, b1_ref, w2_ref, b2_ref, out_ref) = refs

    g = pl.program_id(0)
    N, TL, Cop = out_ref.shape
    Cin = xslab_ref.shape[-1]
    TLe = TL + K - 1                      # conv1 rows needed for conv2's halo (2*pad == K-1)

    x = xslab_ref[0]                      # (N*stride, TIN_d, Cin)

    # ---- conv1 + folded BN1: one im2col matmul (N*TLe, K*Cin) @ (K*Cin, Cop) ----------
    taps = []
    for k in range(K):                    # phase r = k % stride was split in the wrapper,
        r, q = k % stride, k // stride    # so every in-kernel slice is stride-1 on sublanes
        taps.append(lax.slice(x, (r, q, 0),
                              ((N - 1) * stride + r + 1, q + TLe, Cin),
                              (stride, 1, 1)))
    xim = jnp.concatenate(taps, axis=-1).reshape(N * TLe, K * Cin)
    h = jnp.dot(xim, w1_ref[...], preferred_element_type=jnp.float32)
    h = jnp.maximum(h + b1_ref[...], 0.0)                 # folded BN1 + ReLU (f32 epilogue)
    # TODO(synk): training-mode dropout (stochastic mask) not implemented; inference identity.

    # Rows whose global conv1 index is outside [0, Lout) act as conv2's zero padding.
    m_glob = g * TL - pad + lax.broadcasted_iota(jnp.int32, (N, TLe, 1), 1)
    valid = jnp.logical_and(m_glob >= 0, m_glob < Lout)
    h = h.reshape(N, TLe, Cop) * valid.astype(jnp.float32)

    # ---- conv2 + folded BN2: one im2col matmul (N*TL, K*Cop) @ (K*Cop, Cop) -----------
    hb = h.astype(w2_ref.dtype)
    taps2 = [lax.slice(hb, (0, k, 0), (N, k + TL, Cop)) for k in range(K)]
    him = jnp.concatenate(taps2, axis=-1).reshape(N * TL, K * Cop)
    y = jnp.dot(him, w2_ref[...], preferred_element_type=jnp.float32) + b2_ref[...]

    # ---- shortcut --------------------------------------------------------------------
    xsc = xsc_ref[...]
    if proj:
        sc = jnp.dot(xsc.reshape(N * TL, Cin), wsc_ref[...],
                     preferred_element_type=jnp.float32) + bsc_ref[...]
    else:
        sc = xsc.astype(jnp.float32).reshape(N * TL, Cop)  # pre-padded to Cop lanes

    out = jnp.maximum(y + sc, 0.0)
    out_ref[...] = out.reshape(N, TL, Cop).astype(out_ref.dtype)


def residual_block_1d(x_ncl, params, *, kernel_size=3, stride=1, padding=1,
                      eps=1e-5, tile_l=512, compute_dtype=jnp.bfloat16):
    """x_ncl: (N, C_in, L) float32, PyTorch NCL layout.  Returns (N, C_out, L_out)."""
    N, Cin, L = x_ncl.shape
    K = kernel_size
    Cout = params['w1'].shape[0]
    assert 2 * padding == K - 1, (
        "ResidualBlock1D needs 'same' conv2 (2*padding == kernel_size-1) for the "
        "residual add to be shape-consistent.")
    Lout = (L + 2 * padding - K) // stride + 1
    proj = 'wsc' in params
    if not proj:
        assert Cin == Cout and stride == 1, (
            "Identity shortcut requires in_channels == out_channels and stride == 1.")

    # ---- tiling over the output length ------------------------------------------------
    if tile_l is None or tile_l >= Lout:
        TL, G = Lout, 1
    else:
        TL = max(8, (tile_l // 8) * 8)        # second-minor block dim must be % 8 when G > 1
        G = pl.cdiv(Lout, TL)
        if G == 1:
            TL = Lout
    Cop = -(-Cout // 128) * 128               # lane-dense output channels

    f32 = jnp.float32
    pad_c = lambda a: jnp.pad(a, [(0, 0)] * (a.ndim - 1) + [(0, Cop - Cout)])

    # ---- fold BatchNorm into conv weights/biases (trace time, free) --------------------
    s1 = (params['g1'] / jnp.sqrt(params['v1'] + eps)).astype(f32)
    s2 = (params['g2'] / jnp.sqrt(params['v2'] + eps)).astype(f32)
    w1 = jnp.transpose(params['w1'].astype(f32), (2, 1, 0)) * s1             # (K, Cin, Cout)
    b1 = ((params['b1'] - params['m1']) * s1 + params['be1']).astype(f32)
    w2 = jnp.transpose(params['w2'].astype(f32), (2, 1, 0)) * s2             # (K, Cout, Cout)
    b2 = ((params['b2'] - params['m2']) * s2 + params['be2']).astype(f32)

    w1_im = pad_c(w1).reshape(K * Cin, Cop).astype(compute_dtype)            # (K*Cin, Cop)
    b1_r = pad_c(b1).reshape(1, Cop)
    w2_im = jnp.pad(w2, ((0, 0), (0, Cop - Cout), (0, Cop - Cout))
                    ).reshape(K * Cop, Cop).astype(compute_dtype)            # (K*Cop, Cop)
    b2_r = pad_c(b2).reshape(1, Cop)

    # ---- conv1 input: phase-split, halo'd slabs (stride decimation done here) ----------
    x_nlc = jnp.transpose(x_ncl, (0, 2, 1)).astype(f32)                      # (N, L, Cin)
    TLe = TL + K - 1
    TIN_d = TLe + (K - 1) // stride
    front = padding * stride + padding
    total = max(front + L + padding, (G - 1) * TL * stride + TIN_d * stride)
    xop = jnp.pad(x_nlc, ((0, 0), (front, total - front - L), (0, 0)))

    idx = ((jnp.arange(G) * (TL * stride))[:, None, None]
           + jnp.arange(stride)[None, :, None]
           + (jnp.arange(TIN_d) * stride)[None, None, :])                    # (G, stride, TIN_d)
    slabs = jnp.transpose(xop[:, idx, :], (1, 0, 2, 3, 4))                   # (G, N, s, TIN_d, Cin)
    slabs = slabs.reshape(G, N * stride, TIN_d, Cin).astype(compute_dtype)

    # ---- shortcut input: stride-decimated rows, padded to G*TL --------------------------
    need = (G * TL - 1) * stride + 1
    xsc_src = jnp.pad(x_nlc, ((0, 0), (0, max(0, need - L)), (0, 0)))
    xsc = lax.slice(xsc_src, (0, 0, 0), (N, need, Cin), (1, stride, 1))      # (N, G*TL, Cin)
    if not proj:
        xsc = pad_c(xsc)                  # identity add happens on the Cop-wide lanes
    xsc = xsc.astype(compute_dtype)

    inputs = [slabs, xsc, w1_im, b1_r, w2_im, b2_r]
    if proj:
        wsc = jnp.transpose(params['wsc'][:, :, 0].astype(f32), (1, 0))      # (Cin, Cout)
        inputs += [pad_c(wsc).astype(compute_dtype),
                   pad_c(params['bsc'].astype(f32)).reshape(1, Cop)]

    def resident(a):                       # full-array block, constant index -> fetched once
        nd = a.ndim
        return pl.BlockSpec(a.shape, lambda g, _nd=nd: (0,) * _nd)

    in_specs = [
        pl.BlockSpec((1,) + slabs.shape[1:], lambda g: (g, 0, 0, 0)),
        pl.BlockSpec((N, TL, xsc.shape[-1]), lambda g: (0, g, 0)),
    ] + [resident(a) for a in inputs[2:]]
    out_specs = pl.BlockSpec((N, TL, Cop), lambda g: (0, g, 0))

    # Explicit VMEM budget: double-buffered tiles + resident params + slack.
    blk_bytes = (slabs.size // G * slabs.dtype.itemsize
                 + N * TL * xsc.shape[-1] * xsc.dtype.itemsize
                 + N * TL * Cop * 4)
    prm_bytes = sum(int(a.size) * a.dtype.itemsize for a in inputs[2:])
    vmem_limit = int(min(max(4 * blk_bytes + 2 * prm_bytes + (4 << 20), 16 << 20), 48 << 20))

    kernel = functools.partial(_resblock1d_kernel, K=K, stride=stride,
                               pad=padding, Lout=Lout, proj=proj)
    out = pl.pallas_call(
        kernel,
        out_shape=jax.ShapeDtypeStruct((N, G * TL, Cop), jnp.float32),
        grid=(G,),
        in_specs=in_specs,
        out_specs=out_specs,
        compiler_params=pltpu.CompilerParams(
            dimension_semantics=("parallel",),
            vmem_limit_bytes=vmem_limit),
    )(*inputs)
    return jnp.transpose(out[:, :Lout, :Cout], (0, 2, 1))                    # back to NCL


def _reference_forward(x, p, *, stride=1, padding=1, eps=1e-5):
    """Pure-JAX reference of the same inference-mode forward pass (NCL layout)."""
    dn = ('NCH', 'OIH', 'NCH')

    def conv1d(x, w, b, s, pd):
        y = lax.conv_general_dilated(x, w, window_strides=(s,),
                                     padding=[(pd, pd)], dimension_numbers=dn)
        return y + b[None, :, None]

    def bn(x, g, be, m, v):
        return (x - m[None, :, None]) * (g / jnp.sqrt(v + eps))[None, :, None] \
               + be[None, :, None]

    y = jax.nn.relu(bn(conv1d(x, p['w1'], p['b1'], stride, padding),
                       p['g1'], p['be1'], p['m1'], p['v1']))
    y = bn(conv1d(y, p['w2'], p['b2'], 1, padding),
           p['g2'], p['be2'], p['m2'], p['v2'])
    sc = conv1d(x, p['wsc'], p['bsc'], stride, 0) if 'wsc' in p else x
    return jax.nn.relu(y + sc)


if __name__ == "__main__":
    key = jax.random.PRNGKey(0)

    def make_params(k, Cin, Cout, K, proj):
        ks = jax.random.split(k, 14)
        p = dict(
            w1=0.3 * jax.random.normal(ks[0], (Cout, Cin, K), jnp.float32),
            b1=0.1 * jax.random.normal(ks[1], (Cout,), jnp.float32),
            g1=1.0 + 0.1 * jax.random.normal(ks[2], (Cout,), jnp.float32),
            be1=0.1 * jax.random.normal(ks[3], (Cout,), jnp.float32),
            m1=0.1 * jax.random.normal(ks[4], (Cout,), jnp.float32),
            v1=1.0 + 0.1 * jnp.abs(jax.random.normal(ks[5], (Cout,), jnp.float32)),
            w2=0.3 * jax.random.normal(ks[6], (Cout, Cout, K), jnp.float32),
            b2=0.1 * jax.random.normal(ks[7], (Cout,), jnp.float32),
            g2=1.0 + 0.1 * jax.random.normal(ks[8], (Cout,), jnp.float32),
            be2=0.1 * jax.random.normal(ks[9], (Cout,), jnp.float32),
            m2=0.1 * jax.random.normal(ks[10], (Cout,), jnp.float32),
            v2=1.0 + 0.1 * jnp.abs(jax.random.normal(ks[11], (Cout,), jnp.float32)),
        )
        if proj:
            p['wsc'] = 0.3 * jax.random.normal(ks[12], (Cout, Cin, 1), jnp.float32)
            p['bsc'] = 0.1 * jax.random.normal(ks[13], (Cout,), jnp.float32)
        return p

    configs = [
        # name            N  Cin Cout  L  K  s  p  proj   compute_dtype  atol
        ("proj_s1_f32",   2,  4,  8,  16, 3, 1, 1, True,  jnp.float32,  1e-3),
        ("proj_s1_bf16",  2,  4,  8,  16, 3, 1, 1, True,  jnp.bfloat16, 8e-2),
        ("proj_s2_bf16",  2,  4,  8,  32, 3, 2, 1, True,  jnp.bfloat16, 8e-2),
        ("ident_bf16",    2,  8,  8,  24, 3, 1, 1, False, jnp.bfloat16, 8e-2),
    ]

    for name, N, Cin, Cout, L, K, s, p, proj, cdt, atol in configs:
        key, kx, kp = jax.random.split(key, 3)
        x = jax.random.normal(kx, (N, Cin, L), jnp.float32)
        params = make_params(kp, Cin, Cout, K, proj)
        out = jax.block_until_ready(residual_block_1d(
            x, params, kernel_size=K, stride=s, padding=p,
            tile_l=8, compute_dtype=cdt))          # tile_l=8 -> multi-tile grid at test size
        ref = _reference_forward(x, params, stride=s, padding=p)
        assert out.shape == ref.shape, (name, out.shape, ref.shape)
        err = float(jnp.max(jnp.abs(out - ref)))
        assert err <= atol, (name, err)
    print("KERNEL_OK")
</pallas_src>

<mosaic_0001>
module attributes {stable_mosaic.version = 11 : i64} {
  func.func @_resblock1d_kernel(%arg0: i32, %arg1: memref<1x2x12x4xf32, #tpu.memory_space<vmem>>, %arg2: memref<2x8x4xf32, #tpu.memory_space<vmem>>, %arg3: memref<12x128xf32, #tpu.memory_space<vmem>>, %arg4: memref<1x128xf32, #tpu.memory_space<vmem>>, %arg5: memref<384x128xf32, #tpu.memory_space<vmem>>, %arg6: memref<1x128xf32, #tpu.memory_space<vmem>>, %arg7: memref<4x128xf32, #tpu.memory_space<vmem>>, %arg8: memref<1x128xf32, #tpu.memory_space<vmem>>, %arg9: memref<2x8x128xf32, #tpu.memory_space<vmem>>) attributes {dimension_semantics = [#tpu.dimension_semantics<parallel>], iteration_bounds = array<i64: 2>, scalar_prefetch = 0 : i64, scratch_operands = 0 : i64, tpu.core_type = #tpu.core_type<tc>, window_params = [{transform_indices = @transform_0, window_bounds = array<i64: 1, 2, 12, 4>}, {transform_indices = @transform_1, window_bounds = array<i64: 2, 8, 4>}, {pipeline_mode = #tpu.pipeline_mode<synchronous>, transform_indices = @transform_2, window_bounds = array<i64: 12, 128>}, {pipeline_mode = #tpu.pipeline_mode<synchronous>, transform_indices = @transform_3, window_bounds = array<i64: 1, 128>}, {pipeline_mode = #tpu.pipeline_mode<synchronous>, transform_indices = @transform_4, window_bounds = array<i64: 384, 128>}, {pipeline_mode = #tpu.pipeline_mode<synchronous>, transform_indices = @transform_5, window_bounds = array<i64: 1, 128>}, {pipeline_mode = #tpu.pipeline_mode<synchronous>, transform_indices = @transform_6, window_bounds = array<i64: 4, 128>}, {pipeline_mode = #tpu.pipeline_mode<synchronous>, transform_indices = @transform_7, window_bounds = array<i64: 1, 128>}, {transform_indices = @transform_8, window_bounds = array<i64: 2, 8, 128>}]} {
    %c0 = arith.constant 0 : index
    %c0_0 = arith.constant 0 : index
    %c0_1 = arith.constant 0 : index
    %c0_2 = arith.constant 0 : index
    %0 = vector.load %arg1[%c0, %c0_0, %c0_1, %c0_2] : memref<1x2x12x4xf32, #tpu.memory_space<vmem>>, vector<1x2x12x4xf32>
    %1 = vector.shape_cast %0 : vector<1x2x12x4xf32> to vector<2x12x4xf32>
    %2 = vector.extract_strided_slice %1 {offsets = [0, 0, 0], sizes = [2, 10, 4], strides = [1, 1, 1]} : vector<2x12x4xf32> to vector<2x10x4xf32>
    %3 = vector.extract_strided_slice %1 {offsets = [0, 1, 0], sizes = [2, 10, 4], strides = [1, 1, 1]} : vector<2x12x4xf32> to vector<2x10x4xf32>
    %4 = vector.extract_strided_slice %1 {offsets = [0, 2, 0], sizes = [2, 10, 4], strides = [1, 1, 1]} : vector<2x12x4xf32> to vector<2x10x4xf32>
    %5 = tpu.concatenate %2, %3, %4 in 2 : vector<2x10x4xf32>, vector<2x10x4xf32>, vector<2x10x4xf32> -> vector<2x10x12xf32>
    %6 = vector.shape_cast %5 : vector<2x10x12xf32> to vector<20x12xf32>
    %c0_3 = arith.constant 0 : index
    %c0_4 = arith.constant 0 : index
    %7 = vector.load %arg3[%c0_3, %c0_4] : memref<12x128xf32, #tpu.memory_space<vmem>>, vector<12x128xf32>
    %cst = arith.constant dense<0.000000e+00> : vector<20x128xf32>
    %8 = tpu.matmul %6, %7, %cst {dimension_numbers = #tpu.dot_dimension_numbers<[1], [0], [0], [1], [0, 0, 1, 1], [], []>} : vector<20x12xf32>, vector<12x128xf32>, vector<20x128xf32> -> vector<20x128xf32>
    %c0_5 = arith.constant 0 : index
    %c0_6 = arith.constant 0 : index
    %9 = vector.load %arg4[%c0_5, %c0_6] : memref<1x128xf32, #tpu.memory_space<vmem>>, vector<1x128xf32>
    %10 = vector.broadcast %9 : vector<1x128xf32> to vector<20x128xf32>
    %11 = arith.addf %8, %10 : vector<20x128xf32>
    %cst_7 = arith.constant 0.000000e+00 : f32
    %12 = vector.broadcast %cst_7 : f32 to vector<20x128xf32>
    %13 = arith.maximumf %11, %12 : vector<20x128xf32>
    %c8_i32 = arith.constant 8 : i32
    %14 = arith.muli %arg0, %c8_i32 : i32
    %c1_i32 = arith.constant 1 : i32
    %15 = arith.subi %14, %c1_i32 : i32
    %16 = tpu.iota {dimensions = array<i32: 1>} : vector<2x10x1xi32>
    %17 = vector.broadcast %15 : i32 to vector<2x10x1xi32>
    %18 = arith.addi %17, %16 : vector<2x10x1xi32>
    %c0_i32 = arith.constant 0 : i32
    %19 = vector.broadcast %c0_i32 : i32 to vector<2x10x1xi32>
    %20 = arith.cmpi sge, %18, %19 : vector<2x10x1xi32>
    %c16_i32 = arith.constant 16 : i32
    %21 = vector.broadcast %c16_i32 : i32 to vector<2x10x1xi32>
    %22 = arith.cmpi slt, %18, %21 : vector<2x10x1xi32>
    %23 = arith.andi %20, %22 : vector<2x10x1xi1>
    %24 = vector.shape_cast %13 : vector<20x128xf32> to vector<2x10x128xf32>
    %25 = arith.extui %23 : vector<2x10x1xi1> to vector<2x10x1xi32>
    %26 = arith.sitofp %25 : vector<2x10x1xi32> to vector<2x10x1xf32>
    %27 = vector.broadcast %26 : vector<2x10x1xf32> to vector<2x10x128xf32>
    %28 = arith.mulf %24, %27 : vector<2x10x128xf32>
    %29 = vector.extract_strided_slice %28 {offsets = [0, 0, 0], sizes = [2, 8, 128], strides = [1, 1, 1]} : vector<2x10x128xf32> to vector<2x8x128xf32>
    %30 = vector.extract_strided_slice %28 {offsets = [0, 1, 0], sizes = [2, 8, 128], strides = [1, 1, 1]} : vector<2x10x128xf32> to vector<2x8x128xf32>
    %31 = vector.extract_strided_slice %28 {offsets = [0, 2, 0], sizes = [2, 8, 128], strides = [1, 1, 1]} : vector<2x10x128xf32> to vector<2x8x128xf32>
    %32 = tpu.concatenate %29, %30, %31 in 2 : vector<2x8x128xf32>, vector<2x8x128xf32>, vector<2x8x128xf32> -> vector<2x8x384xf32>
    %33 = vector.shape_cast %32 : vector<2x8x384xf32> to vector<16x384xf32>
    %c0_8 = arith.constant 0 : index
    %c0_9 = arith.constant 0 : index
    %34 = vector.load %arg5[%c0_8, %c0_9] : memref<384x128xf32, #tpu.memory_space<vmem>>, vector<384x128xf32>
    %cst_10 = arith.constant dense<0.000000e+00> : vector<16x128xf32>
    %35 = tpu.matmul %33, %34, %cst_10 {dimension_numbers = #tpu.dot_dimension_numbers<[1], [0], [0], [1], [0, 0, 1, 1], [], []>} : vector<16x384xf32>, vector<384x128xf32>, vector<16x128xf32> -> vector<16x128xf32>
    %c0_11 = arith.constant 0 : index
    %c0_12 = arith.constant 0 : index
    %36 = vector.load %arg6[%c0_11, %c0_12] : memref<1x128xf32, #tpu.memory_space<vmem>>, vector<1x128xf32>
    %37 = vector.broadcast %36 : vector<1x128xf32> to vector<16x128xf32>
    %38 = arith.addf %35, %37 : vector<16x128xf32>
    %c0_13 = arith.constant 0 : index
    %c0_14 = arith.constant 0 : index
    %c0_15 = arith.constant 0 : index
    %39 = vector.load %arg2[%c0_13, %c0_14, %c0_15] : memref<2x8x4xf32, #tpu.memory_space<vmem>>, vector<2x8x4xf32>
    %40 = vector.shape_cast %39 : vector<2x8x4xf32> to vector<16x4xf32>
    %c0_16 = arith.constant 0 : index
    %c0_17 = arith.constant 0 : index
    %41 = vector.load %arg7[%c0_16, %c0_17] : memref<4x128xf32, #tpu.memory_space<vmem>>, vector<4x128xf32>
    %cst_18 = arith.constant dense<0.000000e+00> : vector<16x128xf32>
    %42 = tpu.matmul %40, %41, %cst_18 {dimension_numbers = #tpu.dot_dimension_numbers<[1], [0], [0], [1], [0, 0, 1, 1], [], []>} : vector<16x4xf32>, vector<4x128xf32>, vector<16x128xf32> -> vector<16x128xf32>
    %c0_19 = arith.constant 0 : index
    %c0_20 = arith.constant 0 : index
    %43 = vector.load %arg8[%c0_19, %c0_20] : memref<1x128xf32, #tpu.memory_space<vmem>>, vector<1x128xf32>
    %44 = vector.broadcast %43 : vector<1x128xf32> to vector<16x128xf32>
    %45 = arith.addf %42, %44 : vector<16x128xf32>
    %46 = arith.addf %38, %45 : vector<16x128xf32>
    %cst_21 = arith.constant 0.000000e+00 : f32
    %47 = vector.broadcast %cst_21 : f32 to vector<16x128xf32>
    %48 = arith.maximumf %46, %47 : vector<16x128xf32>
    %49 = vector.shape_cast %48 : vector<16x128xf32> to vector<2x8x128xf32>
    %c0_22 = arith.constant 0 : index
    %c0_23 = arith.constant 0 : index
    %c0_24 = arith.constant 0 : index
    %50 = vector.load %arg9[%c0_22, %c0_23, %c0_24] : memref<2x8x128xf32, #tpu.memory_space<vmem>>, vector<2x8x128xf32>
    tpu.vector_store %arg9[%c0_22, %c0_23, %c0_24], %49 {strides = array<i32>} : memref<2x8x128xf32, #tpu.memory_space<vmem>>, vector<2x8x128xf32>,
    return
  }
  func.func @transform_0(%arg0: i32) -> (i32, i32, i32, i32) {
    %c0_i32 = arith.constant 0 : i32
    %c0_i32_0 = arith.constant 0 : i32
    %c0_i32_1 = arith.constant 0 : i32
    %c0_i32_2 = arith.constant 0 : i32
    return %arg0, %c0_i32, %c0_i32_0, %c0_i32_1 : i32, i32, i32, i32
  }
  func.func @transform_1(%arg0: i32) -> (i32, i32, i32) {
    %c0_i32 = arith.constant 0 : i32
    %c0_i32_0 = arith.constant 0 : i32
    %c0_i32_1 = arith.constant 0 : i32
    return %c0_i32, %arg0, %c0_i32_0 : i32, i32, i32
  }
  func.func @transform_2(%arg0: i32) -> (i32, i32) {
    %c0_i32 = arith.constant 0 : i32
    %c0_i32_0 = arith.constant 0 : i32
    %c0_i32_1 = arith.constant 0 : i32
    return %c0_i32, %c0_i32_0 : i32, i32
  }
  func.func @transform_3(%arg0: i32) -> (i32, i32) {
    %c0_i32 = arith.constant 0 : i32
    %c0_i32_0 = arith.constant 0 : i32
    %c0_i32_1 = arith.constant 0 : i32
    return %c0_i32, %c0_i32_0 : i32, i32
  }
  func.func @transform_4(%arg0: i32) -> (i32, i32) {
    %c0_i32 = arith.constant 0 : i32
    %c0_i32_0 = arith.constant 0 : i32
    %c0_i32_1 = arith.constant 0 : i32
    return %c0_i32, %c0_i32_0 : i32, i32
  }
  func.func @transform_5(%arg0: i32) -> (i32, i32) {
    %c0_i32 = arith.constant 0 : i32
    %c0_i32_0 = arith.constant 0 : i32
    %c0_i32_1 = arith.constant 0 : i32
    return %c0_i32, %c0_i32_0 : i32, i32
  }
  func.func @transform_6(%arg0: i32) -> (i32, i32) {
    %c0_i32 = arith.constant 0 : i32
    %c0_i32_0 = arith.constant 0 : i32
    %c0_i32_1 = arith.constant 0 : i32
    return %c0_i32, %c0_i32_0 : i32, i32
  }
  func.func @transform_7(%arg0: i32) -> (i32, i32) {
    %c0_i32 = arith.constant 0 : i32
    %c0_i32_0 = arith.constant 0 : i32
    %c0_i32_1 = arith.constant 0 : i32
    return %c0_i32, %c0_i32_0 : i32, i32
  }
  func.func @transform_8(%arg0: i32) -> (i32, i32, i32) {
    %c0_i32 = arith.constant 0 : i32
    %c0_i32_0 = arith.constant 0 : i32
    %c0_i32_1 = arith.constant 0 : i32
    return %c0_i32, %arg0, %c0_i32_0 : i32, i32, i32
  }
}

</mosaic_0001>

<bundles_post_ra>
// kernel: tpu_custom_call.1
= control target key start
LH: loop header
LB: loop body
LE: loop exit
PB: predicated region body
PF: predicated region fallthrough
CT: control target
= control target key end

     0   :  { %13 = vsyncpa [#allocation4], 0  ;;  %s1902_s0 = inlined_call_operand.vmem [shape: f32[2,2,12,4], index: 0, kind: input, shape index: {}]   ;;  %s1903_s1 = inlined_call_operand.vmem [shape: f32[2,16,4], index: 1, kind: input, shape index: {}]   ;;  %s1904_s2 = inlined_call_operand.vmem [shape: f32[12,128], index: 2, kind: input, shape index: {}]   ;;  %s1905_s3 = inlined_call_operand.vmem [shape: f32[1,128], index: 3, kind: input, shape index: {}]   ;;  %s1906_s4 = inlined_call_operand.hbm [shape: f32[384,128], index: 4, kind: input, shape index: {}]   ;;  %s1907_s5 = inlined_call_operand.vmem [shape: f32[1,128], index: 5, kind: input, shape index: {}]   ;;  %s1908_s6 = inlined_call_operand.vmem [shape: f32[4,128], index: 6, kind: input, shape index: {}]   ;;  %s1909_s7 = inlined_call_operand.vmem [shape: f32[1,128], index: 7, kind: input, shape index: {}]   ;;  %s1910_s8 = inlined_call_operand.hbm [shape: f32[2,16,128], index: 8, kind: output, shape index: {}]  }
   0x1   :  { %14 = vsyncpa [#allocation5], 0 }
   0x2   :  { %16 = vsyncpa [#allocation5 + $0x1], 0  ;;  %s1633_s27 = smov 0   ;;  %s1635_s28 = smov 0  }
   0x3   :  { %s1637_s29 = smov 0   ;;  %s1639_s30 = smov 0  }
   0x4 LB: > { %s1654_s9 = sadd.s32 4294967295, %s1571_s30   ;;  %s1270_s10 = sadd.s32 4294967294, %s1571_s30   ;;  %s1571_s30 = sphi %s1639_s30, %s1921_s30   ;;  %s1567_s29 = sphi %s1637_s29, %s1920_s29   ;;  %s1563_s28 = sphi %s1635_s28, %s1919_s28   ;;  %s1559_s27 = sphi %s1633_s27, %s1918_s27  }
   0x5   : > { %s1658_s11 = sadd.s32 1, %s1571_s30   ;;  %s55_s12 = sadd.s32 1, %s1567_s29 }
   0x6   : > { %s52_s13 = ssub.s32 %s1571_s30, %s1658_s11  ;;  %p62_p0 = scmp.ne.s32.totalorder %s1567_s29, %s1563_s28 }
   0x7   : > { %p53_p1 = scmp.eq.s32.totalorder %s52_s13, 0  ;;  %p63_p2 = scmp.eq.s32.totalorder %s1571_s30, 0 }
   0x8   : > { %p218_p3 = scmp.eq.s32.totalorder %s1654_s9, 1  ;;  %p223_p4 = scmp.ne.s32.totalorder %s1563_s28, %s1559_s27 }
   0x9   : > { %s1670_s14 = scalar_select %p53_p1, %s1567_s29, %s55_s12  }
   0xa   : > { %p1672_p5 = por %p63_p2, %p62_p0  ;;  %p1676_p6 = por %p218_p3, %p62_p0 }
   0xb   : > { %p224_p7 = scmp.eq.s32.totalorder %s1270_s10, 1  ;;  %p1271_p8 = scmp.ge.s32.totalorder %s1571_s30, 1 }
   0xc   : > { %s1913_s16 = scalar_select %p1676_p6, 1, 0 }
   0xd   : > { %p231_p9 = scmp.lt.s32.totalorder %s1571_s30, 3  ;;  %p1682_p10 = por %p224_p7, %p223_p4 }
   0xe   : > { %p1432_p11 = scmp.eq.s32.totalorder %s1654_s9, 0  ;;  %s1573_s19 = smov [#allocation3]  }
   0xf   : > { %s1914_s17 = scalar_select %p1682_p10, 1, 0 }
  0x10   : > { %p1687_p12 = pnand %p1271_p8, %p231_p9  ;;  %s249_s20 = sshll.u32 %s1573_s19, 4  ;;  %s250_s20 = int_to_ptr.vmem [resolvable:$true] %s249_s20 }
  0x11   : > { %s1492_s21 = scalar_lea.vmem %s250_s20, 6144  ;;  %p1500_p7 = scmp.lt.s32.totalorder %s250_s20, %s250_s20 }
  0x12   : > { %p1424_p13 = pneg %p1687_p12  ;;  %p1493_p2 = scmp.ne.s32.totalorder %s250_s20, %s1492_s21 }
  0x13   : > { %p1501_p10 = scmp.lt.s32.totalorder %s1492_s21, %s1492_s21 }
  0x14   : > { %p1425_p0 = pnand %p1432_p11, %p1424_p13 }
  0x15   : > { %p1502_p6 = por %p1501_p10, %p1500_p7 }
  0x16   : > { %p1483_p1 = pneg %p1425_p0 }
  0x18   : > { %p1495_p3 = pnand %p1493_p2, %p1483_p1 }
  0x1a   : > { %p1496_p4 = pneg %p1495_p3 }
  0x1c   : > { %p1503_p8 = pnand %p1502_p6, %p1496_p4 }
  0x1e   : > { %1506 = shalt.err (!%p1503_p8)
}
  0x1f   : > { %s1574_s22 = smov 128   ;;  %s1575_s23 = smov 8  }
  0x20   : > { %1427 = dma.hbm_to_vmem [thread:$0]  (!%p1425_p0), %s1906_s4, 6144, %s250_s20, [#allocation4], %s1574_s22, %s1574_s22, %s1575_s23  }
  0x21   : > { %p1273_p9 = scmp.ge.s32.totalorder %s1571_s30, 2 }
  0x23   : > { %268 = sbr.rel (%p1273_p9) target bundleno = 45 (0x2d), region = 40 }
  0x28   : > { %279 = sbr.rel (!%p1672_p5) target bundleno = 45 (0x2d), region = 48  ;;  %s281_s26 = sand.u32 (%p1672_p5), 1, %s1567_s29  }
  0x29   : > { %s1275_s10 = sshll.u32 (%p1672_p5), %s1571_s30, 3  ;;  %s1274_s12 = sshll.u32 (%p1672_p5), %s281_s26, 4 }
  0x2a   : > { %s285_s21 = scalar_lea.vmem (%p1672_p5), %s1903_s1, %s1275_s10  ;;  %s283_s20 = scalar_lea.vmem (%p1672_p5), [#allocation2], %s1274_s12 }
  0x2b   : > { %v316_v0 = vld [vmem:[%s285_s21] sm:$0xff] (%p1672_p5)  ;;  %v318_v1 = vld [vmem:[%s285_s21 + $0x10] sm:$0xff] (%p1672_p5) }
  0x2c   : > { %317 = vst [vmem:[%s283_s20] sm:$0xff] (%p1672_p5), %v316_v0  ;;  %319 = vst [vmem:[%s283_s20 + $0x8] sm:$0xff] (%p1672_p5), %v318_v1 }
  0x2d PF: > { %328 = sbr.rel (%p1687_p12) target bundleno = 632 (0x278), region = 86  ;;  %s331_s15 = sand.u32 (!%p1687_p12), 1, %s1563_s28  }
  0x2e   : > { %s1713_s22 = sshll.u32 (!%p1687_p12), %s331_s15, 4 }
  0x2f   : > { %s333_s23 = scalar_lea.vmem (!%p1687_p12), [#allocation2], %s1713_s22 }
  0x32   : > { %1550 = dma.done.wait (%p1432_p11), [#allocation4], 6144  }
  0x33   : > { %1552 = vsyncadd (%p1432_p11), [#allocation4], 4294961152  ;;  %p373_p5 = scmp.lt.s32.totalorder %s1654_s9, 1  ;;  %vm386_vm0 = vcmask 1046528   ;;  %vm405_vm1 = vcmask 1045504   ;;  %s1576_s12 = smov 4   ;;  %v442_v33 = vlaneseq }
  0x34   : > { %v1577_v16 = vmov 0.0   ;;  %v487_v17 = vld [vmem:[%s1904_s2 + $0x8] sm:$0xf]  ;;  %vm544_vm2 = vcmask 1043456   ;;  %v486_v20 = vld [vmem:[%s1904_s2] sm:$0xff]  ;;  %vm1578_vm3 = vmmov 0  }
  0x35   : > { %s374_s24 = scalar_select %p373_p5, %s1654_s9, 1  ;;  %1365 = vmatprep.subr.mxu0 %v1577_v16  ;;  %1369 = vmatprep.mubr.msk.f32.mxu0 %vm1578_vm3, %v1577_v16  ;;  %v891_v21 = vld [vmem:[#allocation3 + $0xf8] sm:$0xff]  ;;  %v890_v23 = vld [vmem:[#allocation3 + $0xf0] sm:$0xff]  ;;  %v889_v26 = vld [vmem:[#allocation3 + $0xe8] sm:$0xff]  ;;  %v1580_v31 = vmov 1983009808  }
  0x36   : > { %1366 = vmatpush3.msk.msra.mxu0 %vm544_vm2, %v487_v17  ;;  %v875_v22 = vld [vmem:[#allocation3 + $0x78] sm:$0xff]  ;;  %1306 = vmatprep.subr.mxu1 %v891_v21  ;;  %v874_v25 = vld [vmem:[#allocation3 + $0x70] sm:$0xff]  ;;  %v873_v27 = vld [vmem:[#allocation3 + $0x68] sm:$0xff]  ;;  %v440_v32 = vunpack.c.l.s4 %v1580_v31  ;;  %v1763_v35 = vshrl.u32 %v442_v33, 7  ;;  %vm424_vm4 = vcmask 31744   ;;  %vm429_vm5 = vcmask 64512  }
  0x37   : > { %s1300_s18 = sshll.u32 %s374_s24, 5  ;;  %1367 = vmatprep.subr.mxu0 %v1577_v16  ;;  %s1579_s24 = smov 8   ;;  %v1760_v24 = vld [vmem:[#allocation3 + $0x178] sm:$0xff]  ;;  %1307 = vmatpush3.msra.mxu1 %v875_v22  ;;  %v888_v28 = vld [vmem:[#allocation3 + $0xe0] sm:$0xff]  ;;  %vm537_vm6 = vcmask 97280   ;;  %v885_v21 = vld [vmem:[#allocation3 + $0xc8] sm:$0xff] }
  0x38   : > { %s377_s10 = scalar_lea.vmem %s1902_s0, %s1300_s18  ;;  %1368 = vmatpush3.msra.mxu0 %v486_v20  ;;  %1308 = vmatprep.subr.mxu1 %v890_v23  ;;  %v872_v29 = vld [vmem:[#allocation3 + $0x60] sm:$0xff]  ;;  %v887_v30 = vld [vmem:[#allocation3 + $0xd8] sm:$0xff]  ;;  %v441_v34 = vunpack.c.0.s8 %v440_v32  ;;  %v870_v20 = vld [vmem:[#allocation3 + $0x50] sm:$0xff]  ;;  %s1287_s26 = sshll.u32 %s1654_s9, 3 }
  0x39   : > { %v1725_v2 = vld [vmem:[%s377_s10] sm:$0xff]  ;;  %v1727_v3 = vld [vmem:[%s377_s10 + $0x8] sm:$0xf]  ;;  %v1729_v4 = vld [vmem:[%s377_s10 + $0x10] sm:$0xff]  ;;  %1378 = vmatprep.subr.mxu0 %v1760_v24  ;;  %1309 = vmatpush3.msra.mxu1 %v874_v25  ;;  %s372_s18 = scalar_lea.vmem [#allocation6], %s1713_s22  ;;  %s1860_s22 = scalar_lea.sflag [#allocation5], %s331_s15 }
  0x3a   : > { %v387_v5 = vrot.slane %v1725_v2, 1  ;;  %v388_v6 = vrot.slane %v1727_v3, 1  ;;  %v1733_v7 = vld [vmem:[%s377_s10 + $0x18] sm:$0xf]  ;;  %v390_v8 = vrot.slane %v1729_v4, 1  ;;  %v406_v9 = vrot.slane %v1725_v2, 2  ;;  %1310 = vmatprep.subr.mxu1 %v889_v26 }
  0x3b   : > { %v391_v10 = vrot.slane %v1733_v7, 1  ;;  %v407_v11 = vrot.slane %v1727_v3, 2  ;;  %v409_v12 = vrot.slane %v1729_v4, 2  ;;  %v410_v13 = vrot.slane %v1733_v7, 2  ;;  %1311 = vmatpush3.msra.mxu1 %v873_v27  ;;  %v871_v17 = vld [vmem:[#allocation3 + $0x58] sm:$0xff]  ;;  %v902_v22 = vld [vmem:[#allocation3 + $0x150] sm:$0xff] }
  0x3c   : > { %v389_v14 = vsel %vm386_vm0, %v387_v5, %v388_v6  ;;  %1312 = vmatprep.subr.mxu1 %v888_v28  ;;  %v1766_v38 = vsub.s32 %v441_v34, %v1763_v35  ;;  %v869_v23 = vld [vmem:[#allocation3 + $0x48] sm:$0xff]  ;;  %v868_v26 = vld [vmem:[#allocation3 + $0x40] sm:$0xff]  ;;  %v883_v27 = vld [vmem:[#allocation3 + $0xb8] sm:$0xff]  ;;  %s1288_s10 = sadd.s32 4294967295, %s1287_s26  ;;  %s1178_s25 = sshll.u32 %s372_s18, 4  ;;  %s1851_s25 = int_to_ptr.vmem [resolvable:$true] %s1178_s25 }
  0x3d   : > { %393 = vrot.lane.b32.xlu0 %v389_v14, %s1576_s12  ;;  %v392_v15 = vsel %vm386_vm0, %v390_v8, %v391_v10  ;;  %v408_v18 = vsel %vm405_vm1, %v406_v9, %v407_v11  ;;  %v411_v19 = vsel %vm405_vm1, %v409_v12, %v410_v13  ;;  %1313 = vmatpush3.msra.mxu1 %v872_v29  ;;  %v906_v9 = vld [vmem:[#allocation3 + $0x170] sm:$0xff]  ;;  %v904_v14 = vld [vmem:[#allocation3 + $0x160] sm:$0xff]  ;;  %v901_v25 = vld [vmem:[#allocation3 + $0x148] sm:$0xff]  ;;  %s1297_s26 = sshll.u32 %s1654_s9, 7  ;;  %s1507_s19 = scalar_lea.vmem %s1851_s25, 256 }
  0x3e   : > { %397 = vrot.lane.b32.xlu1 %v392_v15, %s1576_s12  ;;  %1314 = vmatprep.subr.mxu1 %v887_v30  ;;  %v900_v28 = vld [vmem:[#allocation3 + $0x140] sm:$0xff]  ;;  %v867_v29 = vld [vmem:[#allocation3 + $0x38] sm:$0xff]  ;;  %v882_v30 = vld [vmem:[#allocation3 + $0xb0] sm:$0xff]  ;;  %s1856_s13 = scalar_lea.hbm %s1910_s8, %s1297_s26  ;;  %p1508_p6 = scmp.ne.s32.totalorder %s1851_s25, %s1507_s19 }
  0x3f   : > { %1315 = vmatpush3.msra.mxu1 %v871_v17  ;;  %v899_v31 = vld [vmem:[#allocation3 + $0x138] sm:$0xff]  ;;  %v866_v32 = vld [vmem:[#allocation3 + $0x30] sm:$0xff]  ;;  %v881_v33 = vld [vmem:[#allocation3 + $0xa8] sm:$0xff]  ;;  %p1916_p10 = scmp.ne.s32.totalorder %s1913_s16, 0  ;;  %s1585_s9 = smov [#allocation6]  }
  0x40   : > { %v898_v34 = vld [vmem:[#allocation3 + $0x130] sm:$0xff]  ;;  %s1511_s21 = sshll.u32 %s1585_s9, 4  ;;  %s1512_s21 = int_to_ptr.vmem [resolvable:$false] %s1511_s21 }
  0x41   : > { %412 = vrot.lane.b32.xlu0 %v408_v18, %s1579_s24  ;;  %v886_v18 = vld [vmem:[#allocation3 + $0xd0] sm:$0xff]  ;;  %p1509_p11 = pnand %p1508_p6, %p1916_p10  ;;  %p1514_p13 = scmp.lt.s32.totalorder %s1851_s25, %s1512_s21 }
  0x42   : > { %416 = vrot.lane.b32.xlu1 %v411_v19, %s1579_s24  ;;  %v903_v19 = vld [vmem:[#allocation3 + $0x158] sm:$0xff]  ;;  %1316 = vmatprep.subr.mxu1 %v886_v18 }
  0x43   : > { %1317 = vmatpush3.msra.mxu1 %v870_v20  ;;  %p1510_p12 = pneg %p1509_p11 }
  0x44   : > { %1318 = vmatprep.subr.mxu1 %v885_v21 }
  0x45   : > { %395 = vrot.lane.b32.xlu0 %v388_v6, %s1576_s12  ;;  %1319 = vmatpush3.msra.mxu1 %v869_v23 }
  0x46   : > { %414 = vrot.lane.b32.xlu1 %v407_v11, %s1579_s24 }
  0x49   : > { %399 = vrot.lane.b32.xlu0 %v391_v10, %s1576_s12 }
  0x4a   : > { %418 = vrot.lane.b32.xlu1 %v410_v13, %s1579_s24 }
  0xaf   : > { %v394_v36 = vpop.permute.xlu0 %393 }
  0xb0   : > { %v398_v37 = vpop.permute.xlu1 %397  ;;  %v425_v40 = vsel %vm424_vm4, %v1725_v2, %v394_v36  ;;  %v865_v36 = vld [vmem:[#allocation3 + $0x28] sm:$0xff] }
  0xb1   : > { %v427_v39 = vsel %vm424_vm4, %v1729_v4, %v398_v37  ;;  %v880_v37 = vld [vmem:[#allocation3 + $0xa0] sm:$0xff] }
  0xb3   : > { %v413_v41 = vpop.permute.xlu0 %412 }
  0xb4   : > { %v430_v42 = vsel %vm429_vm5, %v425_v40, %v413_v41  ;;  %v417_v43 = vpop.permute.xlu1 %416  ;;  %v864_v40 = vld [vmem:[#allocation3 + $0x20] sm:$0xff]  ;;  %v879_v41 = vld [vmem:[#allocation3 + $0x98] sm:$0xff] }
  0xb5   : > { %v438_v44 = vcombine.high %v430_v42, %v430_v42  ;;  %v445_v45 = vrot.slane %v430_v42, %v1766_v38  ;;  %v432_v46 = vsel %vm429_vm5, %v427_v39, %v417_v43  ;;  %v897_v39 = vld [vmem:[#allocation3 + $0x128] sm:$0xff]  ;;  %v896_v42 = vld [vmem:[#allocation3 + $0x120] sm:$0xff]  ;;  %v863_v43 = vld [vmem:[#allocation3 + $0x18] sm:$0xff] }
  0xb6   : > { %v462_v47 = vcombine.high %v432_v46, %v432_v46  ;;  %v469_v48 = vrot.slane %v432_v46, %v1766_v38  ;;  %v862_v46 = vld [vmem:[#allocation3 + $0x10] sm:$0xff] }
  0xb7   : > { %v452_v49 = vrot.slane %v438_v44, %v1766_v38  ;;  %v453_v50 = vcombine.high %v445_v45, %v445_v45  ;;  %v396_v51 = vpop.permute.xlu0 %395  ;;  %v878_v44 = vld [vmem:[#allocation3 + $0x90] sm:$0xff] }
  0xb8   : > { %v476_v52 = vrot.slane %v462_v47, %v1766_v38  ;;  %v426_v53 = vsel %vm424_vm4, %v1727_v3, %v396_v51  ;;  %v415_v54 = vpop.permute.xlu1 %414  ;;  %v477_v57 = vcombine.high %v469_v48, %v469_v48  ;;  %v877_v47 = vld [vmem:[#allocation3 + $0x88] sm:$0xff] }
  0xb9   : > { %v454_v55 = vcombine.high %v452_v49, %v452_v49  ;;  %v495_v56 = vcombine.low %v445_v45, %v453_v50  ;;  %v431_v58 = vsel %vm429_vm5, %v426_v53, %v415_v54  ;;  %v895_v45 = vld [vmem:[#allocation3 + $0x118] sm:$0xff]  ;;  %v876_v50 = vld [vmem:[#allocation3 + $0x80] sm:$0xff]  ;;  %v893_v51 = vld [vmem:[#allocation3 + $0x108] sm:$0xff] }
  0xba   : > { %v461_v59 = vrot.slane %v431_v58, %v1766_v38  ;;  %v513_v3 = vcombine.low %v477_v57, %v476_v52  ;;  %v478_v11 = vcombine.high %v476_v52, %v476_v52  ;;  %v860_v52 = vld [vmem:[#allocation3] sm:$0xff]  ;;  %v635_v57 = vadd.s32 8, %v1763_v35 }
  0xbb   : > { %v496_v60 = vcombine.low %v452_v49, %v454_v55  ;;  %v400_v61 = vpop.permute.xlu0 %399  ;;  %v503_v1 = vrot.slane %v495_v56, %v1766_v38  ;;  %v861_v49 = vld [vmem:[#allocation3 + $0x8] sm:$0xff]  ;;  %v892_v53 = vld [vmem:[#allocation3 + $0x100] sm:$0xff]  ;;  %v636_v55 = vstv %s1288_s10  ;;  %v1581_v58 = vmov 269488144  }
  0xbc   : > { %v512_v62 = vcombine.low %v461_v59, %v469_v48  ;;  %v428_v63 = vsel %vm424_vm4, %v1733_v7, %v400_v61  ;;  %v419_v0 = vpop.permute.xlu1 %418  ;;  %v527_v10 = vrot.slane %v513_v3, %v1766_v38  ;;  %v905_v7 = vld [vmem:[#allocation3 + $0x168] sm:$0xff]  ;;  %v894_v48 = vld [vmem:[#allocation3 + $0x110] sm:$0xff]  ;;  %v1802_v54 = vld [vmem:[%s1908_s6] sm:$0xf]  ;;  %v637_v56 = vadd.s32 %v636_v55, %v1763_v35 }
  0xbd   : > { %v510_v2 = vrot.slane %v496_v60, %v1766_v38  ;;  %v433_v4 = vsel %vm429_vm5, %v428_v63, %v419_v0  ;;  %v707_v59 = vunpack.c.l.s4 %v1581_v58  ;;  %v1582_v60 = vmov 842150450  }
  0xbe   : > { %v520_v5 = vrot.slane %v512_v62, %v1766_v38  ;;  %v485_v6 = vrot.slane %v433_v4, %v1766_v38  ;;  %v714_v61 = vunpack.c.l.s4 %v1582_v60  ;;  %v1583_v62 = vmov 1414812756  }
  0xbf   : > { %v511_v8 = vcombine.low %v503_v1, %v510_v2  ;;  %v721_v63 = vunpack.c.l.s4 %v1583_v62  ;;  %vm639_vm7 = vcmp.ge.s32.totalorder %v637_v56, 0  ;;  %vm641_vm8 = vcmp.lt.s32.totalorder %v637_v56, 16 }
  0xc0   : > { %v529_v12 = vcombine.low %v478_v11, %v485_v6  ;;  %v528_v13 = vcombine.low %v520_v5, %v527_v10  ;;  %v638_v0 = vadd.s32 %v636_v55, %v635_v57  ;;  %v1584_v1 = vmov 1987475062   ;;  %v1282_v6 = vld [vmem:[%s1905_s3] ss:$0 sm:$0xff]  ;;  %vm643_vm9 = vmand %vm639_vm7, %vm641_vm8 }
  0xc1   : > { %1370 = vmatmul.mubr.msk.f32.vlgmr.msra.gmra.mxu0 %vm537_vm6, %v511_v8  ;;  %v728_v2 = vunpack.c.l.s4 %v1584_v1  ;;  %v708_v3 = vunpack.c.0.s8 %v707_v59  ;;  %v715_v4 = vunpack.c.0.s8 %v714_v61  ;;  %v722_v5 = vunpack.c.0.s8 %v721_v63 }
  0xc2   : > { %1372 = vmatprep.mubr.msk.f32.mxu0 %vm1578_vm3, %v1577_v16  ;;  %1379 = vmatpush3.msra.mxu0 %v1760_v24  ;;  %v536_v15 = vrot.slane %v529_v12, %v1766_v38  ;;  %v884_v24 = vld [vmem:[#allocation3 + $0xc0] sm:$0xff]  ;;  %vm640_vm10 = vcmp.ge.s32.totalorder %v638_v0, 0  ;;  %vm642_vm11 = vcmp.lt.s32.totalorder %v638_v0, 16 }
  0xc3   : > { %1380 = vmatprep.subr.mxu0 %v906_v9  ;;  %1320 = vmatprep.subr.mxu1 %v884_v24  ;;  %v729_v8 = vunpack.c.0.s8 %v728_v2  ;;  %v711_v10 = vsub.s32 %v708_v3, %v1763_v35  ;;  %v718_v11 = vsub.s32 %v715_v4, %v1763_v35  ;;  %vm644_vm12 = vmand %vm640_vm10, %vm642_vm11 }
  0xc4   : > { %1381 = vmatpush3.msra.mxu0 %v906_v9  ;;  %1321 = vmatpush3.msra.mxu1 %v868_v26 }
  0xc5   : > { %1373 = vmatmul.mubr.msk.f32.gmra.mxu0 %vm537_vm6, %v528_v13  ;;  %1382 = vmatprep.subr.mxu0 %v905_v7  ;;  %v1289_v13 = vsel %vm643_vm9, 1.0, %v1577_v16  ;;  %v732_v17 = vsub.s32 %v729_v8, %v1763_v35 }
  0xc6   : > { %1375 = vmatprep.mubr.msk.f32.mxu0 %vm1578_vm3, %v1577_v16  ;;  %1383 = vmatpush3.msra.mxu0 %v905_v7  ;;  %v725_v7 = vsub.s32 %v722_v5, %v1763_v35  ;;  %v712_v18 = vrot.slane %v1289_v13, %v711_v10 }
  0xc7   : > { %1384 = vmatprep.subr.mxu0 %v904_v14  ;;  %1322 = vmatprep.subr.mxu1 %v883_v27 }
  0xc8   : > { %1385 = vmatpush3.msra.mxu0 %v904_v14  ;;  %1323 = vmatpush3.msra.mxu1 %v867_v29  ;;  %v726_v20 = vrot.slane %v1289_v13, %v725_v7 }
  0xc9   : > { %1376 = vmatmul.mubr.msk.f32.gmra.mxu0 %vm537_vm6, %v536_v15  ;;  %1386 = vmatprep.subr.mxu0 %v903_v19 }
  0xca   : > { %1387 = vmatpush3.msra.mxu0 %v903_v19  ;;  %1324 = vmatprep.subr.mxu1 %v882_v30  ;;  %v719_v19 = vrot.slane %v1289_v13, %v718_v11  ;;  %v733_v30 = vrot.slane %v1289_v13, %v732_v17 }
  0xcb   : > { %1388 = vmatprep.subr.mxu0 %v902_v22  ;;  %1325 = vmatpush3.msra.mxu1 %v866_v32 }
  0xcc   : > { %1389 = vmatpush3.msra.mxu0 %v902_v22  ;;  %1326 = vmatprep.subr.mxu1 %v881_v33 }
  0xcd   : > { %1390 = vmatprep.subr.mxu0 %v901_v25  ;;  %1327 = vmatpush3.msra.mxu1 %v865_v36 }
  0xce   : > { %1391 = vmatpush3.msra.mxu0 %v901_v25  ;;  %1328 = vmatprep.subr.mxu1 %v880_v37  ;;  %v1290_v25 = vsel %vm644_vm12, 1.0, %v1577_v16 }
  0xcf   : > { %1392 = vmatprep.subr.mxu0 %v900_v28  ;;  %1329 = vmatpush3.msra.mxu1 %v864_v40  ;;  %v740_v32 = vrot.slane %v1290_v25, %v711_v10  ;;  %v1291_v25 = vld [vmem:[%s1907_s5] ss:$0 sm:$0xff] }
  0xd0   : > { %1393 = vmatpush3.msra.mxu0 %v900_v28  ;;  %1330 = vmatprep.subr.mxu1 %v879_v41 }
  0xd1   : > { %1394 = vmatprep.subr.mxu0 %v899_v31  ;;  %1331 = vmatpush3.msra.mxu1 %v863_v43 }
  0xd2   : > { %1395 = vmatpush3.msra.mxu0 %v899_v31  ;;  %1332 = vmatprep.subr.mxu1 %v878_v44 }
  0xd3   : > { %1396 = vmatprep.subr.mxu0 %v898_v34  ;;  %1333 = vmatpush3.msra.mxu1 %v862_v46 }
  0xd4   : > { %1397 = vmatpush3.msra.mxu0 %v898_v34  ;;  %1334 = vmatprep.subr.mxu1 %v877_v47 }
  0xd5   : > { %1398 = vmatprep.subr.mxu0 %v897_v39  ;;  %1335 = vmatpush3.msra.mxu1 %v861_v49 }
  0xd6   : > { %1399 = vmatpush3.msra.mxu0 %v897_v39  ;;  %1336 = vmatprep.subr.mxu1 %v876_v50 }
  0xd7   : > { %1400 = vmatprep.subr.mxu0 %v896_v42  ;;  %1337 = vmatpush3.msra.mxu1 %v860_v52 }
  0xd8   : > { %1401 = vmatpush3.msra.mxu0 %v896_v42 }
  0xd9   : > { %1402 = vmatprep.subr.mxu0 %v895_v45 }
  0xda   : > { %1403 = vmatpush3.msra.mxu0 %v895_v45 }
  0xdb   : > { %1404 = vmatprep.subr.mxu0 %v894_v48 }
  0xdc   : > { %1405 = vmatpush3.msra.mxu0 %v894_v48 }
  0xdd   : > { %1406 = vmatprep.subr.mxu0 %v893_v51 }
  0xde   : > { %1407 = vmatpush3.msra.mxu0 %v893_v51 }
  0xdf   : > { %1408 = vmatprep.subr.mxu0 %v892_v53 }
  0xe0   : > { %1409 = vmatpush3.msra.mxu0 %v892_v53 }
  0xe1   : > { %1413 = vmatprep.subr.msk.mxu0 %vm544_vm2, %v1802_v54 }
 0x181   : > { %v614_v9 = vpop.f32.mrf.mxu0 }
 0x182   : > { %v615_v12 = vadd.f32 %v1282_v6, %v614_v9 }
 0x183   : > { %v1371_v14 = vpop.f32.mrf.mxu0 }
 0x184   : > { %v628_v15 = vmax.f32 %v615_v12, 0.0 }
 0x185   : > { %v619_v21 = vpop.f32.mrf.mxu0 }
 0x186   : > { %v648_v22 = vcombine.high %v628_v15, %v628_v15  ;;  %v655_v23 = vrot.slane %v628_v15, %v1766_v38  ;;  %v620_v24 = vadd.f32 %v1282_v6, %v619_v21  ;;  %v1066_v21 = vld [vmem:[%s333_s23 + $0x8] sm:$0xff] }
 0x187   : > { %v1374_v26 = vpop.f32.mrf.mxu0 }
 0x188   : > { %v662_v27 = vrot.slane %v648_v22, %v1766_v38  ;;  %v663_v28 = vcombine.high %v655_v23, %v655_v23  ;;  %v629_v29 = vmax.f32 %v620_v24, 0.0  ;;  %v746_v31 = vmul.f32 %v712_v18, %v655_v23 }
 0x189   : > { %v624_v33 = vpop.f32.mrf.mxu0 }
 0x18a   : > { %v664_v35 = vcombine.high %v662_v27, %v662_v27  ;;  %v747_v34 = vmul.f32 %v719_v19, %v663_v28  ;;  %v748_v36 = vmul.f32 %v726_v20, %v662_v27  ;;  %v665_v37 = vcombine.high %v629_v29, %v629_v29 }
 0x18b   : > { %v672_v39 = vrot.slane %v629_v29, %v1766_v38  ;;  %v625_v40 = vadd.f32 %v1282_v6, %v624_v33  ;;  %v1377_v41 = vpop.f32.mrf.mxu0 }
 0x18c   : > { %v764_v42 = vcombine.low %v746_v31, %v747_v34  ;;  %v679_v16 = vrot.slane %v665_v37, %v1766_v38  ;;  %v749_v43 = vmul.f32 %v733_v30, %v664_v35  ;;  %v824_v44 = vcombine.low %v747_v34, %v748_v36 }
 0x18d   : > { %v680_v45 = vcombine.high %v672_v39, %v672_v39  ;;  %v750_v46 = vmul.f32 %v740_v32, %v672_v39  ;;  %v630_v47 = vmax.f32 %v625_v40, 0.0 }
 0x18e   : > { %v681_v48 = vcombine.high %v679_v16, %v679_v16  ;;  %v752_v49 = vmul.f32 %v719_v19, %v679_v16  ;;  %v765_v50 = vcombine.low %v748_v36, %v749_v43  ;;  %v832_v55 = vrot.slane %v824_v44, %v1766_v38  ;;  %v1065_v19 = vld [vmem:[%s333_s23] sm:$0xff]  ;;  %s1513_s23 = scalar_lea.vmem %s1512_s21, 512 }
 0x18f   : > { %v751_v51 = vmul.f32 %v712_v18, %v680_v45  ;;  %v825_v52 = vcombine.low %v749_v43, %v750_v46  ;;  %v688_v53 = vrot.slane %v630_v47, %v1766_v38  ;;  %v772_v57 = vrot.slane %v764_v42, %v1766_v38  ;;  %p1515_p0 = scmp.lt.s32.totalorder %s1513_s23, %s1507_s19 }
 0x190   : > { %v753_v56 = vmul.f32 %v726_v20, %v681_v48  ;;  %v779_v58 = vrot.slane %v765_v50, %v1766_v38  ;;  %v808_v59 = vrot.slane %v750_v46, %v1766_v38 }
 0x191   : > { %v781_v60 = vcombine.low %v751_v51, %v752_v49  ;;  %v689_v61 = vcombine.high %v688_v53, %v688_v53  ;;  %v754_v62 = vmul.f32 %v733_v30, %v688_v53  ;;  %v839_v63 = vrot.slane %v825_v52, %v1766_v38  ;;  %v1292_v30 = vld [vmem:[%s1909_s7] ss:$0 sm:$0xff]  ;;  %p1516_p1 = por %p1515_p0, %p1514_p13 }
 0x192   : > { %v780_v0 = vcombine.low %v772_v57, %v779_v58  ;;  %v841_v1 = vcombine.low %v752_v49, %v753_v56  ;;  %v817_v6 = vrot.slane %v808_v59, 1 }
 0x193   : > { %v755_v2 = vmul.f32 %v740_v32, %v689_v61  ;;  %v782_v3 = vcombine.low %v753_v56, %v754_v62  ;;  %v840_v4 = vcombine.low %v832_v55, %v839_v63  ;;  %v789_v10 = vrot.slane %v781_v60, %v1766_v38  ;;  %p1517_p2 = pnand %p1516_p1, %p1510_p12 }
 0x194   : > { %v816_v5 = vrot.slane %v780_v0, 1  ;;  %v849_v12 = vrot.slane %v841_v1, %v1766_v38 }
 0x195   : > { %v796_v8 = vrot.slane %v782_v3, %v1766_v38  ;;  %v842_v9 = vcombine.low %v754_v62, %v755_v2  ;;  %1410 = vmatprep.mubr.f32.mxu0 %v840_v4  ;;  %v815_v11 = vrot.slane %v755_v2, %v1766_v38 }
 0x196   : > { %v818_v7 = vsel %vm386_vm0, %v816_v5, %v817_v6 }
 0x197   : > { %v856_v13 = vrot.slane %v842_v9, %v1766_v38  ;;  %979 = vmatprep.mubr.f32.mxu1 %v818_v7  ;;  %v797_v14 = vcombine.low %v789_v10, %v796_v8  ;;  %v820_v18 = vrot.slane %v815_v11, 1 }
 0x198   : > { %980 = vmatmul.mubr.f32.vlgmr.msra.gmra.mxu1 %v780_v0 }
 0x199   : > { %v857_v15 = vcombine.low %v849_v12, %v856_v13  ;;  %v819_v17 = vrot.slane %v797_v14, 1 }
 0x19b   : > { %1411 = vmatmul.mubr.f32.vlgmr.msra.gmra.mxu0 %v857_v15  ;;  %v821_v20 = vsel %vm386_vm0, %v819_v17, %v820_v18 }
 0x19c   : > { %984 = vmatprep.mubr.f32.mxu1 %v821_v20  ;;  %1414 = vmatpush3.msk.msra.mxu0 %vm544_vm2, %v1802_v54 }
 0x19d   : > { %985 = vmatmul.mubr.f32.gmra.mxu1 %v797_v14  ;;  %1415 = vmatprep.mubr.msk.f32.mxu0 %vm424_vm4, %v1065_v19 }
 0x19f   : > { %1416 = vmatmul.mubr.msk.f32.vlgmr.msra.gmra.mxu0 %vm424_vm4, %v1066_v21 }
 0x258   : > { %v1338_v38 = vpop.f32.mrf.mxu1 }
 0x25a   : > { %v1339_v22 = vpop.f32.mrf.mxu1 }
 0x25b   : > { %v1340_v23 = vadd.f32 %v1339_v22, %v1338_v38  ;;  %v1412_v24 = vpop.f32.mrf.mxu0 }
 0x25d   : > { %v1341_v26 = vpop.f32.mrf.mxu1  ;;  %v1056_v27 = vpop.f32.mrf.mxu0  ;;  %v982_v54 = vadd.f32 %v1340_v23, %v1291_v25 }
 0x25f   : > { %v1342_v28 = vpop.f32.mrf.mxu1  ;;  %v1417_v29 = vpop.f32.mrf.mxu0  ;;  %v1057_v33 = vadd.f32 %v1056_v27, %v982_v54 }
 0x260   : > { %v1343_v31 = vadd.f32 %v1342_v28, %v1341_v26  ;;  %v1156_v37 = vadd.f32 %v1417_v29, %v1292_v30 }
 0x261   : > { %v1150_v32 = vpop.f32.mrf.mxu0 }
 0x262   : > { %v987_v35 = vadd.f32 %v1343_v31, %v1291_v25  ;;  %v1151_v34 = vadd.f32 %v1292_v30, %v1150_v32 }
 0x264   : > { %v1062_v36 = vadd.f32 %v1412_v24, %v987_v35  ;;  %v1159_v39 = vadd.f32 %v1151_v34, %v1057_v33 }
 0x266   : > { %v1160_v40 = vadd.f32 %v1156_v37, %v1062_v36  ;;  %v1161_v41 = vmax.f32 %v1159_v39, 0.0 }
 0x268   : > { %v1162_v42 = vmax.f32 %v1160_v40, 0.0  ;;  %1163 = vst [vmem:[%s372_s18] sm:$0xff] %v1161_v41 }
 0x26a   : > { %1164 = vst [vmem:[%s372_s18 + $0x8] sm:$0xff] %v1162_v42 }
 0x26b   : > { %1520 = shalt.err (!%p1517_p2)
}
 0x26c   : > { %s1521_s15 = scalar_lea.hbm %s1856_s13, 256  ;;  %s1525_s26 = scalar_lea.hbm %s1910_s8, 512 }
 0x26d   : > { %p1522_p3 = scmp.ne.s32.totalorder %s1856_s13, %s1521_s15  ;;  %p1526_p8 = scmp.lt.s32.totalorder %s1856_s13, %s1910_s8 }
 0x26e   : > { %p1527_p5 = scmp.lt.s32.totalorder %s1525_s26, %s1521_s15 }
 0x26f   : > { %p1523_p4 = pnand %p1522_p3, %p1916_p10 }
 0x270   : > { %p1528_p6 = por %p1527_p5, %p1526_p8 }
 0x271   : > { %p1524_p7 = pneg %p1523_p4 }
 0x273   : > { %p1529_p11 = pnand %p1528_p6, %p1524_p7 }
 0x275   : > { %1532 = shalt.err (!%p1529_p11)
}
 0x276   : > { %s1586_s19 = smov 128   ;;  %s1587_s9 = smov 256  }
 0x277   : > { %1422 = dma.vmem_to_hbm [thread:$0]  (%p1916_p10), %s1851_s25, 256, %s1856_s13, %s1860_s22, %s1586_s19, %s1587_s9, %s1579_s24  }
 0x278 PF: > { %s1193_s21 = sand.u32 1, %s1559_s27   ;;  %p1917_p12 = scmp.ne.s32.totalorder %s1914_s17, 0 }
 0x279   : > { %s1194_s23 = scalar_lea.sflag [#allocation5], %s1193_s21 }
 0x27a   : > { %p1429_p13 = pnand %p1273_p9, %p1917_p12 }
 0x27c   : > { %p1430_p0 = pneg %p1429_p13 }
 0x27e   : > { %1554 = dma.done.wait (%p1430_p0), %s1194_s23, 256  }
 0x27f   : > { %1556 = vsyncadd (%p1430_p0), %s1194_s23, 4294967040  ;;  %p19_p1 = scmp.ge.s32.totalorder %s1658_s11, 4   ;;  %s1918_s27 = smov %s1563_s28 }
 0x280   : > { %s1919_s28 = smov %s1567_s29  ;;  %s1920_s29 = smov %s1670_s14 }
 0x281   : > { %s1921_s30 = smov %s1658_s11  ;;  %21 = sbr.rel (!%p19_p1) target bundleno = 4 (0x4), region = 138 }
 0x286   :  { %1199 = vsyncpa [#allocation4], 1 }
 0x287   :  { %1201 = vsyncpa [#allocation4 + $0x1], 1 }
 0x288   :  { %1202 = vsyncpa [#allocation5], 1 }
 0x289   :  { %1204 = vsyncpa [#allocation5 + $0x1], 1 }

</bundles_post_ra>
